<compile_context>
chip_gen: v6e
topology: v6e:2x2x1
jax: 0.10.0
libtpu: 0.0.40
codegen_flags: <defaults>
</compile_context>

<pallas_src>
import math

import jax
import jax.numpy as jnp
from jax.experimental import pallas as pl
from jax.experimental.pallas import tpu as pltpu

LEAKY_SLOPE = 0.01   # torch default negative_slope for nn.LeakyReLU
BN_EPS = 1e-5        # torch default eps for nn.BatchNorm1d
TILE_B = 512         # batch tile: multiple of 256 (v6e/v7x MXU) and 128 (v5e)


def _round_up(n, m):
    return ((n + m - 1) // m) * m


def _mlp_kernel(x_ref,
                w1, b1, w2, b2, w3, b3, w4, b4, w5, b5,
                o_ref):
    """Fused 5-layer MLP forward on one (TILE_B, input_dim) batch tile.

    Weights are VMEM-resident (constant index_map), BN already folded into
    W/b, matmul operands in bf16 with f32 accumulation, elementwise math in f32.
    """
    x = x_ref[...]

    def leaky(h):
        return jnp.where(h >= 0, h, LEAKY_SLOPE * h)

    # block 1: Linear(input_dim, 512) [+BN folded] + LeakyReLU (+ Dropout=id)
    h = jnp.dot(x.astype(jnp.bfloat16), w1[...],
                preferred_element_type=jnp.float32) + b1[...]
    h = leaky(h)

    # block 2: Linear(512, 256) [+BN folded] + LeakyReLU (+ Dropout=id)
    h = jnp.dot(h.astype(jnp.bfloat16), w2[...],
                preferred_element_type=jnp.float32) + b2[...]
    h = leaky(h)

    # block 3: Linear(256, 128) [+BN folded] + LeakyReLU (+ Dropout=id)
    h = jnp.dot(h.astype(jnp.bfloat16), w3[...],
                preferred_element_type=jnp.float32) + b3[...]
    h = leaky(h)

    # block 4: Linear(128, 64) [+BN folded] + ReLU
    h = jnp.dot(h.astype(jnp.bfloat16), w4[...],
                preferred_element_type=jnp.float32) + b4[...]
    h = jnp.maximum(h, 0.0)

    # regressor: Linear(64, 1) as VPU multiply + lane reduce (MXU N=1 is wasteful)
    o_ref[...] = jnp.sum(h * w5[...], axis=-1, keepdims=True) + b5[...]


def _xavier_uniform(key, fan_in, fan_out):
    # matches nn.init.xavier_uniform_ (gain=1); returned as (in, out) layout
    limit = math.sqrt(6.0 / (fan_in + fan_out))
    return jax.random.uniform(key, (fan_in, fan_out), jnp.float32, -limit, limit)


def _linear_default_bias(key, fan_in, fan_out):
    # torch nn.Linear default bias init: U(-1/sqrt(fan_in), 1/sqrt(fan_in))
    bound = 1.0 / math.sqrt(fan_in)
    return jax.random.uniform(key, (1, fan_out), jnp.float32, -bound, bound)


def init_params(input_dim, key):
    """Init matching the torch module, with eval-mode BN folded into the Linear
    weights (one-time constant fold) and matmul weights cast to bf16 once."""
    dims = [input_dim, 512, 256, 128, 64]
    keys = jax.random.split(key, 16)
    params = []
    ki = 0
    for i in range(4):
        fan_in, fan_out = dims[i], dims[i + 1]
        w = _xavier_uniform(keys[ki], fan_in, fan_out); ki += 1
        b = _linear_default_bias(keys[ki], fan_in, fan_out); ki += 1
        # BatchNorm1d eval-mode fold: gamma=1, beta=0, mean=0, var=1
        gamma = jnp.ones((1, fan_out), jnp.float32)
        beta = jnp.zeros((1, fan_out), jnp.float32)
        running_mean = jnp.zeros((1, fan_out), jnp.float32)
        running_var = jnp.ones((1, fan_out), jnp.float32)
        scale = gamma / jnp.sqrt(running_var + BN_EPS)          # (1, fan_out)
        shift = beta - running_mean * scale                     # (1, fan_out)
        w_folded = (w * scale).astype(jnp.bfloat16)             # column scale, bf16 for MXU
        b_folded = b * scale + shift                            # stays f32
        params += [w_folded, b_folded]
    # regressor Linear(64, 1): torch default init (kaiming_uniform, a=sqrt(5))
    fan_in, fan_out = 64, 1
    bound_w = math.sqrt(6.0 / ((1.0 + 5.0) * fan_in))
    w5 = jax.random.uniform(keys[ki], (fan_in, fan_out), jnp.float32,
                            -bound_w, bound_w); ki += 1
    b5 = _linear_default_bias(keys[ki], fan_in, fan_out); ki += 1
    w5_row = w5.reshape(1, fan_in)                              # (1, 64) for VPU reduce
    params += [w5_row, b5]
    return params


def regression_nn_forward(x, params, tile_b=TILE_B):
    batch, input_dim = x.shape
    # Batch tile: MXU-friendly, but never larger than (batch rounded up to 8).
    tb = min(tile_b, _round_up(batch, 8))
    padded = _round_up(batch, tb)
    if padded != batch:
        x = jnp.pad(x, ((0, padded - batch), (0, 0)))
    grid = (padded // tb,)

    def const_spec(arr):
        # Full-array block, constant index_map -> DMA'd once, VMEM-resident.
        return pl.BlockSpec(arr.shape, lambda i: (0, 0))

    out = pl.pallas_call(
        _mlp_kernel,
        out_shape=jax.ShapeDtypeStruct((padded, 1), jnp.float32),
        grid=grid,
        in_specs=[pl.BlockSpec((tb, input_dim), lambda i: (i, 0))]
                 + [const_spec(p) for p in params],
        out_specs=pl.BlockSpec((tb, 1), lambda i: (i, 0)),
        compiler_params=pltpu.CompilerParams(
            dimension_semantics=("parallel",)),   # shards batch tiles across TCs (v7x)
    )(x, *params)
    return out[:batch]


def _reference_forward(x, params):
    """Pure-JAX reference with the same bf16-operand / f32-accumulation math."""
    w1, b1, w2, b2, w3, b3, w4, b4, w5, b5 = params

    def leaky(h):
        return jnp.where(h >= 0, h, LEAKY_SLOPE * h)

    h = leaky(jnp.dot(x.astype(jnp.bfloat16), w1,
                      preferred_element_type=jnp.float32) + b1)
    h = leaky(jnp.dot(h.astype(jnp.bfloat16), w2,
                      preferred_element_type=jnp.float32) + b2)
    h = leaky(jnp.dot(h.astype(jnp.bfloat16), w3,
                      preferred_element_type=jnp.float32) + b3)
    h = jnp.maximum(jnp.dot(h.astype(jnp.bfloat16), w4,
                            preferred_element_type=jnp.float32) + b4, 0.0)
    return jnp.sum(h * w5, axis=-1, keepdims=True) + b5


if __name__ == "__main__":
    key = jax.random.PRNGKey(0)
    k_x, k_x2, k_p = jax.random.split(key, 3)

    input_dim = 32
    params = init_params(input_dim, k_p)

    # Small-batch case (single tile).
    x_small = jax.random.normal(k_x, (8, input_dim), jnp.float32)
    out_small = jax.block_until_ready(regression_nn_forward(x_small, params))
    ref_small = _reference_forward(x_small, params)
    assert out_small.shape == (8, 1)
    assert jnp.allclose(out_small, ref_small, atol=2e-3, rtol=2e-3), \
        "small-batch mismatch vs JAX reference"

    # Multi-tile case: exercises the batch grid + padding path (2 grid steps).
    x_big = jax.random.normal(k_x2, (1000, input_dim), jnp.float32)
    out_big = jax.block_until_ready(regression_nn_forward(x_big, params))
    ref_big = _reference_forward(x_big, params)
    assert out_big.shape == (1000, 1)
    assert jnp.allclose(out_big, ref_big, atol=2e-3, rtol=2e-3), \
        "multi-tile mismatch vs JAX reference"

    print("KERNEL_OK")
</pallas_src>

<mosaic_0001>
module attributes {stable_mosaic.version = 11 : i64} {
  func.func @_mlp_kernel(%arg0: i32, %arg1: memref<8x32xf32, #tpu.memory_space<vmem>>, %arg2: memref<32x512xbf16, #tpu.memory_space<vmem>>, %arg3: memref<1x512xf32, #tpu.memory_space<vmem>>, %arg4: memref<512x256xbf16, #tpu.memory_space<vmem>>, %arg5: memref<1x256xf32, #tpu.memory_space<vmem>>, %arg6: memref<256x128xbf16, #tpu.memory_space<vmem>>, %arg7: memref<1x128xf32, #tpu.memory_space<vmem>>, %arg8: memref<128x64xbf16, #tpu.memory_space<vmem>>, %arg9: memref<1x64xf32, #tpu.memory_space<vmem>>, %arg10: memref<1x64xf32, #tpu.memory_space<vmem>>, %arg11: memref<1x1xf32, #tpu.memory_space<vmem>>, %arg12: memref<8x1xf32, #tpu.memory_space<vmem>>) attributes {dimension_semantics = [#tpu.dimension_semantics<parallel>], iteration_bounds = array<i64: 1>, scalar_prefetch = 0 : i64, scratch_operands = 0 : i64, tpu.core_type = #tpu.core_type<tc>, window_params = [{transform_indices = @transform_0, window_bounds = array<i64: 8, 32>}, {pipeline_mode = #tpu.pipeline_mode<synchronous>, transform_indices = @transform_1, window_bounds = array<i64: 32, 512>}, {pipeline_mode = #tpu.pipeline_mode<synchronous>, transform_indices = @transform_2, window_bounds = array<i64: 1, 512>}, {pipeline_mode = #tpu.pipeline_mode<synchronous>, transform_indices = @transform_3, window_bounds = array<i64: 512, 256>}, {pipeline_mode = #tpu.pipeline_mode<synchronous>, transform_indices = @transform_4, window_bounds = array<i64: 1, 256>}, {pipeline_mode = #tpu.pipeline_mode<synchronous>, transform_indices = @transform_5, window_bounds = array<i64: 256, 128>}, {pipeline_mode = #tpu.pipeline_mode<synchronous>, transform_indices = @transform_6, window_bounds = array<i64: 1, 128>}, {pipeline_mode = #tpu.pipeline_mode<synchronous>, transform_indices = @transform_7, window_bounds = array<i64: 128, 64>}, {pipeline_mode = #tpu.pipeline_mode<synchronous>, transform_indices = @transform_8, window_bounds = array<i64: 1, 64>}, {pipeline_mode = #tpu.pipeline_mode<synchronous>, transform_indices = @transform_9, window_bounds = array<i64: 1, 64>}, {pipeline_mode = #tpu.pipeline_mode<synchronous>, transform_indices = @transform_10, window_bounds = array<i64: 1, 1>}, {transform_indices = @transform_11, window_bounds = array<i64: 8, 1>}]} {
    %c0 = arith.constant 0 : index
    %c0_0 = arith.constant 0 : index
    %0 = vector.load %arg1[%c0, %c0_0] : memref<8x32xf32, #tpu.memory_space<vmem>>, vector<8x32xf32>
    %1 = arith.truncf %0 : vector<8x32xf32> to vector<8x32xbf16>
    %c0_1 = arith.constant 0 : index
    %c0_2 = arith.constant 0 : index
    %2 = vector.load %arg2[%c0_1, %c0_2] : memref<32x512xbf16, #tpu.memory_space<vmem>>, vector<32x512xbf16>
    %cst = arith.constant dense<0.000000e+00> : vector<8x512xf32>
    %3 = tpu.matmul %1, %2, %cst {dimension_numbers = #tpu.dot_dimension_numbers<[1], [0], [0], [1], [0, 0, 1, 1], [], []>} : vector<8x32xbf16>, vector<32x512xbf16>, vector<8x512xf32> -> vector<8x512xf32>
    %c0_3 = arith.constant 0 : index
    %c0_4 = arith.constant 0 : index
    %4 = vector.load %arg3[%c0_3, %c0_4] : memref<1x512xf32, #tpu.memory_space<vmem>>, vector<1x512xf32>
    %5 = vector.broadcast %4 : vector<1x512xf32> to vector<8x512xf32>
    %6 = arith.addf %3, %5 : vector<8x512xf32>
    %cst_5 = arith.constant 0.000000e+00 : f32
    %7 = vector.broadcast %cst_5 : f32 to vector<8x512xf32>
    %8 = arith.cmpf oge, %6, %7 : vector<8x512xf32>
    %cst_6 = arith.constant 0.00999999977 : f32
    %9 = vector.broadcast %cst_6 : f32 to vector<8x512xf32>
    %10 = arith.mulf %9, %6 : vector<8x512xf32>
    %11 = arith.select %8, %6, %10 : vector<8x512xi1>, vector<8x512xf32>
    %12 = arith.truncf %11 : vector<8x512xf32> to vector<8x512xbf16>
    %c0_7 = arith.constant 0 : index
    %c0_8 = arith.constant 0 : index
    %13 = vector.load %arg4[%c0_7, %c0_8] : memref<512x256xbf16, #tpu.memory_space<vmem>>, vector<512x256xbf16>
    %cst_9 = arith.constant dense<0.000000e+00> : vector<8x256xf32>
    %14 = tpu.matmul %12, %13, %cst_9 {dimension_numbers = #tpu.dot_dimension_numbers<[1], [0], [0], [1], [0, 0, 1, 1], [], []>} : vector<8x512xbf16>, vector<512x256xbf16>, vector<8x256xf32> -> vector<8x256xf32>
    %c0_10 = arith.constant 0 : index
    %c0_11 = arith.constant 0 : index
    %15 = vector.load %arg5[%c0_10, %c0_11] : memref<1x256xf32, #tpu.memory_space<vmem>>, vector<1x256xf32>
    %16 = vector.broadcast %15 : vector<1x256xf32> to vector<8x256xf32>
    %17 = arith.addf %14, %16 : vector<8x256xf32>
    %cst_12 = arith.constant 0.000000e+00 : f32
    %18 = vector.broadcast %cst_12 : f32 to vector<8x256xf32>
    %19 = arith.cmpf oge, %17, %18 : vector<8x256xf32>
    %cst_13 = arith.constant 0.00999999977 : f32
    %20 = vector.broadcast %cst_13 : f32 to vector<8x256xf32>
    %21 = arith.mulf %20, %17 : vector<8x256xf32>
    %22 = arith.select %19, %17, %21 : vector<8x256xi1>, vector<8x256xf32>
    %23 = arith.truncf %22 : vector<8x256xf32> to vector<8x256xbf16>
    %c0_14 = arith.constant 0 : index
    %c0_15 = arith.constant 0 : index
    %24 = vector.load %arg6[%c0_14, %c0_15] : memref<256x128xbf16, #tpu.memory_space<vmem>>, vector<256x128xbf16>
    %cst_16 = arith.constant dense<0.000000e+00> : vector<8x128xf32>
    %25 = tpu.matmul %23, %24, %cst_16 {dimension_numbers = #tpu.dot_dimension_numbers<[1], [0], [0], [1], [0, 0, 1, 1], [], []>} : vector<8x256xbf16>, vector<256x128xbf16>, vector<8x128xf32> -> vector<8x128xf32>
    %c0_17 = arith.constant 0 : index
    %c0_18 = arith.constant 0 : index
    %26 = vector.load %arg7[%c0_17, %c0_18] : memref<1x128xf32, #tpu.memory_space<vmem>>, vector<1x128xf32>
    %27 = vector.broadcast %26 : vector<1x128xf32> to vector<8x128xf32>
    %28 = arith.addf %25, %27 : vector<8x128xf32>
    %cst_19 = arith.constant 0.000000e+00 : f32
    %29 = vector.broadcast %cst_19 : f32 to vector<8x128xf32>
    %30 = arith.cmpf oge, %28, %29 : vector<8x128xf32>
    %cst_20 = arith.constant 0.00999999977 : f32
    %31 = vector.broadcast %cst_20 : f32 to vector<8x128xf32>
    %32 = arith.mulf %31, %28 : vector<8x128xf32>
    %33 = arith.select %30, %28, %32 : vector<8x128xi1>, vector<8x128xf32>
    %34 = arith.truncf %33 : vector<8x128xf32> to vector<8x128xbf16>
    %c0_21 = arith.constant 0 : index
    %c0_22 = arith.constant 0 : index
    %35 = vector.load %arg8[%c0_21, %c0_22] : memref<128x64xbf16, #tpu.memory_space<vmem>>, vector<128x64xbf16>
    %cst_23 = arith.constant dense<0.000000e+00> : vector<8x64xf32>
    %36 = tpu.matmul %34, %35, %cst_23 {dimension_numbers = #tpu.dot_dimension_numbers<[1], [0], [0], [1], [0, 0, 1, 1], [], []>} : vector<8x128xbf16>, vector<128x64xbf16>, vector<8x64xf32> -> vector<8x64xf32>
    %c0_24 = arith.constant 0 : index
    %c0_25 = arith.constant 0 : index
    %37 = vector.load %arg9[%c0_24, %c0_25] : memref<1x64xf32, #tpu.memory_space<vmem>>, vector<1x64xf32>
    %38 = vector.broadcast %37 : vector<1x64xf32> to vector<8x64xf32>
    %39 = arith.addf %36, %38 : vector<8x64xf32>
    %cst_26 = arith.constant 0.000000e+00 : f32
    %40 = vector.broadcast %cst_26 : f32 to vector<8x64xf32>
    %41 = arith.maximumf %39, %40 : vector<8x64xf32>
    %c0_27 = arith.constant 0 : index
    %c0_28 = arith.constant 0 : index
    %42 = vector.load %arg10[%c0_27, %c0_28] : memref<1x64xf32, #tpu.memory_space<vmem>>, vector<1x64xf32>
    %43 = vector.broadcast %42 : vector<1x64xf32> to vector<8x64xf32>
    %44 = arith.mulf %41, %43 : vector<8x64xf32>
    %cst_29 = arith.constant dense<0.000000e+00> : vector<8xf32>
    %45 = vector.multi_reduction <add>, %44, %cst_29 [1] : vector<8x64xf32> to vector<8xf32>
    %46 = vector.shape_cast %45 : vector<8xf32> to vector<8x1xf32>
    %c0_30 = arith.constant 0 : index
    %c0_31 = arith.constant 0 : index
    %47 = vector.load %arg11[%c0_30, %c0_31] : memref<1x1xf32, #tpu.memory_space<vmem>>, vector<1x1xf32>
    %48 = vector.broadcast %47 : vector<1x1xf32> to vector<8x1xf32>
    %49 = arith.addf %46, %48 : vector<8x1xf32>
    %c0_32 = arith.constant 0 : index
    %c0_33 = arith.constant 0 : index
    %50 = vector.load %arg12[%c0_32, %c0_33] : memref<8x1xf32, #tpu.memory_space<vmem>>, vector<8x1xf32>
    tpu.vector_store %arg12[%c0_32, %c0_33], %49 {strides = array<i32>} : memref<8x1xf32, #tpu.memory_space<vmem>>, vector<8x1xf32>,
    return
  }
  func.func @transform_0(%arg0: i32) -> (i32, i32) {
    %c0_i32 = arith.constant 0 : i32
    %c0_i32_0 = arith.constant 0 : i32
    return %arg0, %c0_i32 : i32, i32
  }
  func.func @transform_1(%arg0: i32) -> (i32, i32) {
    %c0_i32 = arith.constant 0 : i32
    %c0_i32_0 = arith.constant 0 : i32
    %c0_i32_1 = arith.constant 0 : i32
    return %c0_i32, %c0_i32_0 : i32, i32
  }
  func.func @transform_2(%arg0: i32) -> (i32, i32) {
    %c0_i32 = arith.constant 0 : i32
    %c0_i32_0 = arith.constant 0 : i32
    %c0_i32_1 = arith.constant 0 : i32
    return %c0_i32, %c0_i32_0 : i32, i32
  }
  func.func @transform_3(%arg0: i32) -> (i32, i32) {
    %c0_i32 = arith.constant 0 : i32
    %c0_i32_0 = arith.constant 0 : i32
    %c0_i32_1 = arith.constant 0 : i32
    return %c0_i32, %c0_i32_0 : i32, i32
  }
  func.func @transform_4(%arg0: i32) -> (i32, i32) {
    %c0_i32 = arith.constant 0 : i32
    %c0_i32_0 = arith.constant 0 : i32
    %c0_i32_1 = arith.constant 0 : i32
    return %c0_i32, %c0_i32_0 : i32, i32
  }
  func.func @transform_5(%arg0: i32) -> (i32, i32) {
    %c0_i32 = arith.constant 0 : i32
    %c0_i32_0 = arith.constant 0 : i32
    %c0_i32_1 = arith.constant 0 : i32
    return %c0_i32, %c0_i32_0 : i32, i32
  }
  func.func @transform_6(%arg0: i32) -> (i32, i32) {
    %c0_i32 = arith.constant 0 : i32
    %c0_i32_0 = arith.constant 0 : i32
    %c0_i32_1 = arith.constant 0 : i32
    return %c0_i32, %c0_i32_0 : i32, i32
  }
  func.func @transform_7(%arg0: i32) -> (i32, i32) {
    %c0_i32 = arith.constant 0 : i32
    %c0_i32_0 = arith.constant 0 : i32
    %c0_i32_1 = arith.constant 0 : i32
    return %c0_i32, %c0_i32_0 : i32, i32
  }
  func.func @transform_8(%arg0: i32) -> (i32, i32) {
    %c0_i32 = arith.constant 0 : i32
    %c0_i32_0 = arith.constant 0 : i32
    %c0_i32_1 = arith.constant 0 : i32
    return %c0_i32, %c0_i32_0 : i32, i32
  }
  func.func @transform_9(%arg0: i32) -> (i32, i32) {
    %c0_i32 = arith.constant 0 : i32
    %c0_i32_0 = arith.constant 0 : i32
    %c0_i32_1 = arith.constant 0 : i32
    return %c0_i32, %c0_i32_0 : i32, i32
  }
  func.func @transform_10(%arg0: i32) -> (i32, i32) {
    %c0_i32 = arith.constant 0 : i32
    %c0_i32_0 = arith.constant 0 : i32
    %c0_i32_1 = arith.constant 0 : i32
    return %c0_i32, %c0_i32_0 : i32, i32
  }
  func.func @transform_11(%arg0: i32) -> (i32, i32) {
    %c0_i32 = arith.constant 0 : i32
    %c0_i32_0 = arith.constant 0 : i32
    return %arg0, %c0_i32 : i32, i32
  }
}

</mosaic_0001>

<bundles_post_ra>
// kernel: tpu_custom_call.1
= control target key start
LH: loop header
LB: loop body
LE: loop exit
PB: predicated region body
PF: predicated region fallthrough
CT: control target
= control target key end

     0   :  { %s1547_s0 = inlined_call_operand.vmem [shape: f32[8,32], index: 0, kind: input, shape index: {}]   ;;  %s1548_s1 = inlined_call_operand.vmem [shape: bf16[32,512], index: 1, kind: input, shape index: {}]   ;;  %s1549_s2 = inlined_call_operand.vmem [shape: f32[1,512], index: 2, kind: input, shape index: {}]   ;;  %s1550_s3 = inlined_call_operand.hbm [shape: bf16[512,256], index: 3, kind: input, shape index: {}]   ;;  %s1551_s4 = inlined_call_operand.vmem [shape: f32[1,256], index: 4, kind: input, shape index: {}]   ;;  %s1552_s5 = inlined_call_operand.hbm [shape: bf16[256,128], index: 5, kind: input, shape index: {}]   ;;  %s1553_s6 = inlined_call_operand.vmem [shape: f32[1,128], index: 6, kind: input, shape index: {}]   ;;  %s1554_s7 = inlined_call_operand.vmem [shape: bf16[128,64], index: 7, kind: input, shape index: {}]   ;;  %s1555_s8 = inlined_call_operand.vmem [shape: f32[1,64], index: 8, kind: input, shape index: {}]   ;;  %s1556_s9 = inlined_call_operand.vmem [shape: f32[1,64], index: 9, kind: input, shape index: {}]   ;;  %s1557_s10 = inlined_call_operand.<no memory space> [shape: f32[1,1], index: 10, kind: input, shape index: {}]   ;;  %s1558_s11 = inlined_call_operand.vmem [shape: f32[8,1], index: 11, kind: output, shape index: {}]  }
   0x1   :  { %v16_v0 = vstv %s1557_s10 }
   0x2   :  { %17 = vst [vmem:[#allocation2] sm:$0x1] %v16_v0 }
   0x3   :  { %18 = vsyncpa [#allocation4], 0 }
   0x4   :  { %19 = vsyncpa [#allocation6], 0  ;;  %s1386_s19 = smov [#allocation3]  }
   0x5   :  { %s31_s20 = sshll.u32 %s1386_s19, 4  ;;  %s32_s20 = int_to_ptr.vmem [resolvable:$true] %s31_s20 }
   0x6   :  { %s1350_s21 = scalar_lea.vmem %s32_s20, 8192  ;;  %p1355_p1 = scmp.lt.s32.totalorder %s32_s20, %s32_s20 }
   0x7   :  { %p1351_p0 = scmp.ne.s32.totalorder %s32_s20, %s1350_s21  ;;  %p1356_p2 = scmp.lt.s32.totalorder %s1350_s21, %s1350_s21 }
   0x9   :  { %p1357_p3 = por %p1356_p2, %p1355_p1 }
   0xb   :  { %p1358_p4 = pnand %p1357_p3, %p1351_p0 }
   0xd   :  { %1361 = shalt.err (!%p1358_p4)
}
   0xe   :  { %s1387_s22 = smov 128   ;;  %s1388_s23 = smov 8  }
   0xf   :  { %37 = dma.hbm_to_vmem [thread:$0]  %s1550_s3, 8192, %s32_s20, [#allocation4], %s1387_s22, %s1387_s22, %s1388_s23  }
  0x10   :  { %s1389_s10 = smov [#allocation5]  }
  0x11   :  { %s45_s26 = sshll.u32 %s1389_s10, 4  ;;  %s46_s26 = int_to_ptr.vmem [resolvable:$true] %s45_s26 }
  0x12   :  { %s1370_s27 = scalar_lea.vmem %s46_s26, 2048  ;;  %p1375_p6 = scmp.lt.s32.totalorder %s46_s26, %s46_s26 }
  0x13   :  { %p1371_p5 = scmp.ne.s32.totalorder %s46_s26, %s1370_s27  ;;  %p1376_p7 = scmp.lt.s32.totalorder %s1370_s27, %s1370_s27 }
  0x15   :  { %p1377_p8 = por %p1376_p7, %p1375_p6 }
  0x17   :  { %p1378_p9 = pnand %p1377_p8, %p1371_p5 }
  0x19   :  { %1381 = shalt.err (!%p1378_p9)
}
  0x1a   :  { %s1390_s28 = smov 64   ;;  %s1391_s29 = smov 4  }
  0x1b   :  { %51 = dma.hbm_to_vmem [thread:$0]  %s1552_s5, 2048, %s46_s26, [#allocation6], %s1390_s28, %s1390_s28, %s1391_s29  }
  0x1c   :  { %1382 = dma.done.wait [#allocation4], 8192  }
  0x1d   :  { %1383 = vsyncadd [#allocation4], 4294959104 }
  0x1e   :  { %1384 = dma.done.wait [#allocation6], 2048  }
  0x1f   :  { %1385 = vsyncadd [#allocation6], 4294965248  ;;  %v1392_v1 = vmov 0   ;;  %v1210_v2 = vld [vmem:[%s1548_s1 + $0x24] ss:$16 sps:$4 sm:$0xff]   ;;  %vm141_vm0 = vcmask 261120  }
  0x20   :  { %177 = vmatprep.mubr.bf16.mxu0 %v1392_v1  ;;  %218 = vmatprep.mubr.bf16.mxu1 %v1392_v1  ;;  %v1212_v3 = vld [vmem:[%s1548_s1 + $0x2c] ss:$16 sps:$4 sm:$0xff]   ;;  %v1214_v4 = vld [vmem:[%s1548_s1 + $0x20] ss:$16 sps:$4 sm:$0xff]   ;;  %v1215_v5 = vld [vmem:[%s1548_s1 + $0x28] ss:$16 sps:$4 sm:$0xff]  }
  0x21   :  { %157 = vmatprep.subr.bf16.mxu0 %v1210_v2  ;;  %198 = vmatprep.subr.bf16.mxu1 %v1212_v3  ;;  %v1216_v6 = vld [vmem:[%s1548_s1 + $0x4] ss:$16 sps:$4 sm:$0xff]   ;;  %v1218_v7 = vld [vmem:[%s1548_s1 + $0xc] ss:$16 sps:$4 sm:$0xff]   ;;  %v1220_v8 = vld [vmem:[%s1548_s1] ss:$16 sps:$4 sm:$0xff]  }
  0x22   :  { %158 = vmatpush1.bf16.msra.mxu0 %v1214_v4  ;;  %199 = vmatpush1.bf16.msra.mxu1 %v1215_v5  ;;  %v1221_v9 = vld [vmem:[%s1548_s1 + $0x8] ss:$16 sps:$4 sm:$0xff]   ;;  %v69_v10 = vld [vmem:[%s1547_s0] sm:$0xff]  ;;  %vm1394_vm7 = vmmov 0   ;;  %vm1028_vm9 = vcmask 523264   ;;  %vm1040_vm10 = vcmask 7168  }
  0x23   :  { %159 = vmatprep.subr.bf16.mxu0 %v1216_v6  ;;  %200 = vmatprep.subr.bf16.mxu1 %v1218_v7  ;;  %v1222_v11 = vld [vmem:[#allocation3 + $0x70] ss:$8 sps:$4 sm:$0xff]   ;;  %v1224_v12 = vld [vmem:[#allocation3 + $0x74] ss:$8 sps:$4 sm:$0xff]   ;;  %v70_v13 = vpack.c.bf16 %v69_v10, %v69_v10  ;;  %v1230_v16 = vld [vmem:[#allocation3 + $0x64] ss:$8 sps:$4 sm:$0xff]  }
  0x24   :  { %v1225_v14 = vld [vmem:[#allocation3 + $0x170] ss:$8 sps:$4 sm:$0xff]   ;;  %v1227_v15 = vld [vmem:[#allocation3 + $0x174] ss:$8 sps:$4 sm:$0xff]   ;;  %v1233_v17 = vld [vmem:[#allocation3 + $0x164] ss:$8 sps:$4 sm:$0xff]  }
  0x25   :  { %v1228_v18 = vld [vmem:[#allocation3 + $0x60] ss:$8 sps:$4 sm:$0xff]   ;;  %v1236_v20 = vld [vmem:[#allocation3 + $0x54] ss:$8 sps:$4 sm:$0xff]   ;;  %v1234_v22 = vld [vmem:[#allocation3 + $0x50] ss:$8 sps:$4 sm:$0xff]  }
  0x26   :  { %160 = vmatpush1.bf16.msra.mxu0 %v1220_v8  ;;  %201 = vmatpush1.bf16.msra.mxu1 %v1221_v9  ;;  %v1231_v19 = vld [vmem:[#allocation3 + $0x160] ss:$8 sps:$4 sm:$0xff]   ;;  %v1239_v21 = vld [vmem:[#allocation3 + $0x154] ss:$8 sps:$4 sm:$0xff]   ;;  %v1237_v23 = vld [vmem:[#allocation3 + $0x150] ss:$8 sps:$4 sm:$0xff]  }
  0x27   :  { %639 = vmatprep.subr.bf16.mxu0 %v1224_v12  ;;  %680 = vmatprep.subr.bf16.mxu1 %v1227_v15  ;;  %v1242_v24 = vld [vmem:[#allocation3 + $0x44] ss:$8 sps:$4 sm:$0xff]   ;;  %v1240_v26 = vld [vmem:[#allocation3 + $0x40] ss:$8 sps:$4 sm:$0xff]   ;;  %v1248_v28 = vld [vmem:[#allocation3 + $0x34] ss:$8 sps:$4 sm:$0xff]  }
  0x28   :  { %v1245_v25 = vld [vmem:[#allocation3 + $0x144] ss:$8 sps:$4 sm:$0xff]   ;;  %v1243_v27 = vld [vmem:[#allocation3 + $0x140] ss:$8 sps:$4 sm:$0xff]   ;;  %v1251_v29 = vld [vmem:[#allocation3 + $0x134] ss:$8 sps:$4 sm:$0xff]  }
  0x29   :  { %1056 = vmatmul.mubr.msk.bf16.vlgmr.msra.gmra.mxu0 %vm141_vm0, %v70_v13  ;;  %1057 = vmatmul.mubr.msk.bf16.vlgmr.msra.gmra.mxu1 %vm141_vm0, %v70_v13  ;;  %v1246_v30 = vld [vmem:[#allocation3 + $0x30] ss:$8 sps:$4 sm:$0xff]   ;;  %v1254_v32 = vld [vmem:[#allocation3 + $0x24] ss:$8 sps:$4 sm:$0xff]   ;;  %v1252_v34 = vld [vmem:[#allocation3 + $0x20] ss:$8 sps:$4 sm:$0xff]   ;;  %v81_v13 = vlaneseq }
  0x2a   :  { %640 = vmatpush1.bf16.msra.mxu0 %v1222_v11  ;;  %681 = vmatpush1.bf16.msra.mxu1 %v1225_v14  ;;  %v1249_v31 = vld [vmem:[#allocation3 + $0x130] ss:$8 sps:$4 sm:$0xff]   ;;  %v1257_v33 = vld [vmem:[#allocation3 + $0x124] ss:$8 sps:$4 sm:$0xff]   ;;  %v1255_v35 = vld [vmem:[#allocation3 + $0x120] ss:$8 sps:$4 sm:$0xff]  }
  0x2b   :  { %641 = vmatprep.subr.bf16.mxu0 %v1230_v16  ;;  %682 = vmatprep.subr.bf16.mxu1 %v1233_v17  ;;  %v1260_v36 = vld [vmem:[#allocation3 + $0x14] ss:$8 sps:$4 sm:$0xff]   ;;  %v1258_v38 = vld [vmem:[#allocation3 + $0x10] ss:$8 sps:$4 sm:$0xff]   ;;  %v1266_v40 = vld [vmem:[#allocation3 + $0x4] ss:$8 sps:$4 sm:$0xff]  }
  0x2c   :  { %v1263_v37 = vld [vmem:[#allocation3 + $0x114] ss:$8 sps:$4 sm:$0xff]   ;;  %v1261_v39 = vld [vmem:[#allocation3 + $0x110] ss:$8 sps:$4 sm:$0xff]   ;;  %v1269_v41 = vld [vmem:[#allocation3 + $0x104] ss:$8 sps:$4 sm:$0xff]  }
  0x2d   :  { %v1264_v42 = vld [vmem:[#allocation3] ss:$8 sps:$4 sm:$0xff]   ;;  %v1272_v44 = vld [vmem:[#allocation3 + $0xf4] ss:$8 sps:$4 sm:$0xff]   ;;  %v1270_v46 = vld [vmem:[#allocation3 + $0xf0] ss:$8 sps:$4 sm:$0xff]  }
  0x2e   :  { %642 = vmatpush1.bf16.msra.mxu0 %v1228_v18  ;;  %683 = vmatpush1.bf16.msra.mxu1 %v1231_v19  ;;  %v1267_v43 = vld [vmem:[#allocation3 + $0x100] ss:$8 sps:$4 sm:$0xff]   ;;  %v1275_v45 = vld [vmem:[#allocation3 + $0x1f4] ss:$8 sps:$4 sm:$0xff]   ;;  %v1273_v47 = vld [vmem:[#allocation3 + $0x1f0] ss:$8 sps:$4 sm:$0xff]  }
  0x2f   :  { %643 = vmatprep.subr.bf16.mxu0 %v1236_v20  ;;  %684 = vmatprep.subr.bf16.mxu1 %v1239_v21  ;;  %v1278_v48 = vld [vmem:[#allocation3 + $0xe4] ss:$8 sps:$4 sm:$0xff]   ;;  %v1276_v50 = vld [vmem:[#allocation3 + $0xe0] ss:$8 sps:$4 sm:$0xff]   ;;  %v1284_v52 = vld [vmem:[#allocation3 + $0xd4] ss:$8 sps:$4 sm:$0xff]  }
  0x30   :  { %v1281_v49 = vld [vmem:[#allocation3 + $0x1e4] ss:$8 sps:$4 sm:$0xff]   ;;  %v1279_v51 = vld [vmem:[#allocation3 + $0x1e0] ss:$8 sps:$4 sm:$0xff]   ;;  %v1287_v53 = vld [vmem:[#allocation3 + $0x1d4] ss:$8 sps:$4 sm:$0xff]  }
  0x31   :  { %v1282_v54 = vld [vmem:[#allocation3 + $0xd0] ss:$8 sps:$4 sm:$0xff]   ;;  %v1290_v56 = vld [vmem:[#allocation3 + $0xc4] ss:$8 sps:$4 sm:$0xff]   ;;  %v1288_v58 = vld [vmem:[#allocation3 + $0xc0] ss:$8 sps:$4 sm:$0xff]  }
  0x32   :  { %644 = vmatpush1.bf16.msra.mxu0 %v1234_v22  ;;  %685 = vmatpush1.bf16.msra.mxu1 %v1237_v23  ;;  %v1285_v55 = vld [vmem:[#allocation3 + $0x1d0] ss:$8 sps:$4 sm:$0xff]   ;;  %v1293_v57 = vld [vmem:[#allocation3 + $0x1c4] ss:$8 sps:$4 sm:$0xff]   ;;  %v1291_v59 = vld [vmem:[#allocation3 + $0x1c0] ss:$8 sps:$4 sm:$0xff]  }
  0x33   :  { %645 = vmatprep.subr.bf16.mxu0 %v1242_v24  ;;  %686 = vmatprep.subr.bf16.mxu1 %v1245_v25  ;;  %v1296_v60 = vld [vmem:[#allocation3 + $0xb4] ss:$8 sps:$4 sm:$0xff]   ;;  %v1294_v62 = vld [vmem:[#allocation3 + $0xb0] ss:$8 sps:$4 sm:$0xff]   ;;  %v1302_v0 = vld [vmem:[#allocation3 + $0xa4] ss:$8 sps:$4 sm:$0xff]  }
  0x34   :  { %v1299_v61 = vld [vmem:[#allocation3 + $0x1b4] ss:$8 sps:$4 sm:$0xff]   ;;  %v1297_v63 = vld [vmem:[#allocation3 + $0x1b0] ss:$8 sps:$4 sm:$0xff]   ;;  %v1305_v1 = vld [vmem:[#allocation3 + $0x1a4] ss:$8 sps:$4 sm:$0xff]  }
  0x35   :  { %v1300_v2 = vld [vmem:[#allocation3 + $0xa0] ss:$8 sps:$4 sm:$0xff]   ;;  %v1308_v4 = vld [vmem:[#allocation3 + $0x94] ss:$8 sps:$4 sm:$0xff]   ;;  %v1306_v6 = vld [vmem:[#allocation3 + $0x90] ss:$8 sps:$4 sm:$0xff]  }
  0x36   :  { %646 = vmatpush1.bf16.msra.mxu0 %v1240_v26  ;;  %687 = vmatpush1.bf16.msra.mxu1 %v1243_v27  ;;  %v1303_v3 = vld [vmem:[#allocation3 + $0x1a0] ss:$8 sps:$4 sm:$0xff]   ;;  %v1311_v5 = vld [vmem:[#allocation3 + $0x194] ss:$8 sps:$4 sm:$0xff]   ;;  %v1309_v7 = vld [vmem:[#allocation3 + $0x190] ss:$8 sps:$4 sm:$0xff]  }
  0x37   :  { %647 = vmatprep.subr.bf16.mxu0 %v1248_v28  ;;  %688 = vmatprep.subr.bf16.mxu1 %v1251_v29  ;;  %v1312_v8 = vld [vmem:[#allocation3 + $0x80] ss:$8 sps:$4 sm:$0xff]   ;;  %v1314_v9 = vld [vmem:[#allocation3 + $0x84] ss:$8 sps:$4 sm:$0xff]   ;;  %v1318_v12 = vld [vmem:[#allocation5 + $0x78] sm:$0xff]   ;;  %v1491_v14 = vshrl.u32 %v81_v13, 7 }
  0x38   :  { %v1315_v10 = vld [vmem:[#allocation3 + $0x180] ss:$8 sps:$4 sm:$0xff]   ;;  %v1317_v11 = vld [vmem:[#allocation3 + $0x184] ss:$8 sps:$4 sm:$0xff]  }
  0x39   :  { %v83_v15 = vsub.s32 0, %v1491_v14  ;;  %v91_v16 = vsub.s32 2, %v1491_v14  ;;  %v79_v17 = vld [vmem:[%s1549_s2] sm:$0xf]  ;;  %v87_v18 = vsub.s32 1, %v1491_v14  ;;  %v95_v19 = vsub.s32 3, %v1491_v14 }
  0x3a   :  { %648 = vmatpush1.bf16.msra.mxu0 %v1246_v30  ;;  %689 = vmatpush1.bf16.msra.mxu1 %v1249_v31 }
  0x3b   :  { %649 = vmatprep.subr.bf16.mxu0 %v1254_v32  ;;  %690 = vmatprep.subr.bf16.mxu1 %v1257_v33  ;;  %v84_v20 = vrot.slane %v79_v17, %v83_v15  ;;  %v92_v21 = vrot.slane %v79_v17, %v91_v16  ;;  %v88_v24 = vrot.slane %v79_v17, %v87_v18 }
  0x3c   :  { %v96_v25 = vrot.slane %v79_v17, %v95_v19 }
  0x3e   :  { %650 = vmatpush1.bf16.msra.mxu0 %v1252_v34  ;;  %691 = vmatpush1.bf16.msra.mxu1 %v1255_v35 }
  0x3f   :  { %651 = vmatprep.subr.bf16.mxu0 %v1260_v36  ;;  %692 = vmatprep.subr.bf16.mxu1 %v1263_v37 }
  0x42   :  { %652 = vmatpush1.bf16.msra.mxu0 %v1258_v38  ;;  %693 = vmatpush1.bf16.msra.mxu1 %v1261_v39 }
  0x43   :  { %653 = vmatprep.subr.bf16.mxu0 %v1266_v40  ;;  %694 = vmatprep.subr.bf16.mxu1 %v1269_v41 }
  0x46   :  { %654 = vmatpush1.bf16.msra.mxu0 %v1264_v42  ;;  %695 = vmatpush1.bf16.msra.mxu1 %v1267_v43 }
  0x47   :  { %655 = vmatprep.subr.bf16.mxu0 %v1272_v44  ;;  %696 = vmatprep.subr.bf16.mxu1 %v1275_v45  ;;  %v1319_v45 = vld [vmem:[#allocation5 + $0x38] sm:$0xff]  }
  0x4a   :  { %656 = vmatpush2.bf16.msra.mxu0 %v1270_v46  ;;  %697 = vmatpush2.bf16.msra.mxu1 %v1273_v47 }
  0x4b   :  { %657 = vmatprep.subr.bf16.mxu0 %v1278_v48  ;;  %698 = vmatprep.subr.bf16.mxu1 %v1281_v49  ;;  %v1320_v48 = vld [vmem:[#allocation5 + $0x70] sm:$0xff]  }
  0x4e   :  { %658 = vmatpush2.bf16.msra.mxu0 %v1276_v50  ;;  %699 = vmatpush2.bf16.msra.mxu1 %v1279_v51  ;;  %v1321_v50 = vld [vmem:[#allocation5 + $0x30] sm:$0xff]   ;;  %v1322_v51 = vld [vmem:[#allocation5 + $0x68] sm:$0xff]  }
  0x4f   :  { %659 = vmatprep.subr.bf16.mxu0 %v1284_v52  ;;  %700 = vmatprep.subr.bf16.mxu1 %v1287_v53  ;;  %v1323_v52 = vld [vmem:[#allocation5 + $0x28] sm:$0xff]   ;;  %v1324_v53 = vld [vmem:[#allocation5 + $0x60] sm:$0xff]  }
  0x52   :  { %660 = vmatpush2.bf16.msra.mxu0 %v1282_v54  ;;  %701 = vmatpush2.bf16.msra.mxu1 %v1285_v55  ;;  %v1325_v54 = vld [vmem:[#allocation5 + $0x20] sm:$0xff]   ;;  %v1326_v55 = vld [vmem:[#allocation5 + $0x58] sm:$0xff]  }
  0x53   :  { %661 = vmatprep.subr.bf16.mxu0 %v1290_v56  ;;  %702 = vmatprep.subr.bf16.mxu1 %v1293_v57  ;;  %v1327_v56 = vld [vmem:[#allocation5 + $0x18] sm:$0xff]   ;;  %v1328_v57 = vld [vmem:[#allocation5 + $0x50] sm:$0xff]  }
  0x56   :  { %662 = vmatpush2.bf16.msra.mxu0 %v1288_v58  ;;  %703 = vmatpush2.bf16.msra.mxu1 %v1291_v59  ;;  %v1329_v58 = vld [vmem:[#allocation5 + $0x10] sm:$0xff]   ;;  %v1330_v59 = vld [vmem:[#allocation5 + $0x48] sm:$0xff]  }
  0x57   :  { %663 = vmatprep.subr.bf16.mxu0 %v1296_v60  ;;  %704 = vmatprep.subr.bf16.mxu1 %v1299_v61  ;;  %v1331_v60 = vld [vmem:[#allocation5 + $0x8] sm:$0xff]   ;;  %v1332_v61 = vld [vmem:[#allocation5 + $0x40] sm:$0xff]  }
  0x5a   :  { %664 = vmatpush2.bf16.msra.mxu0 %v1294_v62  ;;  %705 = vmatpush2.bf16.msra.mxu1 %v1297_v63  ;;  %v1333_v62 = vld [vmem:[#allocation5] sm:$0xff]   ;;  %v1334_v63 = vld [vmem:[%s1554_s7 + $0x38] sm:$0xff]  }
  0x5b   :  { %665 = vmatprep.subr.bf16.mxu0 %v1302_v0  ;;  %706 = vmatprep.subr.bf16.mxu1 %v1305_v1  ;;  %v1393_v0 = vmov 0.0   ;;  %v1335_v1 = vld [vmem:[%s1554_s7 + $0x30] sm:$0xff]  }
  0x5e   :  { %666 = vmatpush2.bf16.msra.mxu0 %v1300_v2  ;;  %707 = vmatpush2.bf16.msra.mxu1 %v1303_v3  ;;  %v1336_v2 = vld [vmem:[%s1554_s7 + $0x28] sm:$0xff]   ;;  %v1337_v3 = vld [vmem:[%s1554_s7 + $0x20] sm:$0xff]  }
  0x5f   :  { %667 = vmatprep.subr.bf16.mxu0 %v1308_v4  ;;  %708 = vmatprep.subr.bf16.mxu1 %v1311_v5  ;;  %v1338_v4 = vld [vmem:[%s1554_s7 + $0x18] sm:$0xff]   ;;  %v307_v5 = vld [vmem:[%s1551_s4] sm:$0x3] }
  0x62   :  { %668 = vmatpush2.bf16.msra.mxu0 %v1306_v6  ;;  %709 = vmatpush2.bf16.msra.mxu1 %v1309_v7  ;;  %v312_v6 = vrot.slane %v307_v5, %v83_v15  ;;  %v316_v7 = vrot.slane %v307_v5, %v87_v18 }
  0x63   :  { %669 = vmatprep.subr.bf16.mxu0 %v1314_v9  ;;  %710 = vmatprep.subr.bf16.mxu1 %v1317_v11 }
  0x66   :  { %670 = vmatpush2.bf16.msra.mxu0 %v1312_v8  ;;  %711 = vmatpush2.bf16.msra.mxu1 %v1315_v10 }
  0x67   :  { %1150 = vmatprep.subr.bf16.mxu0 %v1318_v12  ;;  %1181 = vmatprep.subr.bf16.mxu1 %v1393_v0 }
  0xe9   :  { %v179_v22 = vpop.f32.mrf.mxu0  ;;  %v220_v23 = vpop.f32.mrf.mxu1 }
  0xea   :  { %v180_v26 = vadd.f32 %v179_v22, %v84_v20  ;;  %v221_v27 = vadd.f32 %v220_v23, %v92_v21 }
  0xeb   :  { %v181_v28 = vpop.f32.mrf.mxu0  ;;  %v222_v29 = vpop.f32.mrf.mxu1 }
  0xec   :  { %v231_v30 = vmul.f32 0.01, %v180_v26  ;;  %vm227_vm1 = vcmp.ge.f32.partialorder %v180_v26, 0.0  ;;  %v233_v31 = vmul.f32 0.01, %v221_v27  ;;  %v182_v32 = vadd.f32 %v181_v28, %v88_v24  ;;  %v1341_v28 = vld [vmem:[%s1554_s7] sm:$0xff]  }
  0xed   :  { %v223_v33 = vadd.f32 %v222_v29, %v96_v25  ;;  %v183_v34 = vpop.f32.mrf.mxu0  ;;  %v224_v35 = vpop.f32.mrf.mxu1  ;;  %vm229_vm2 = vcmp.ge.f32.partialorder %v221_v27, 0.0 }
  0xee   :  { %vm228_vm3 = vcmp.ge.f32.partialorder %v182_v32, 0.0  ;;  %v232_v36 = vmul.f32 0.01, %v182_v32  ;;  %v235_v39 = vsel %vm227_vm1, %v180_v26, %v231_v30  ;;  %v237_v41 = vsel %vm229_vm2, %v221_v27, %v233_v31  ;;  %v1339_v26 = vld [vmem:[%s1554_s7 + $0x10] sm:$0xff]   ;;  %v1340_v27 = vld [vmem:[%s1554_s7 + $0x8] sm:$0xff]  }
  0xef   :  { %v184_v37 = vpop.f32.mrf.mxu0  ;;  %v225_v38 = vpop.f32.mrf.mxu1  ;;  %vm230_vm4 = vcmp.ge.f32.partialorder %v223_v33, 0.0  ;;  %v234_v40 = vmul.f32 0.01, %v223_v33  ;;  %v239_v46 = vpack.c.bf16 %v235_v39, %v235_v39  ;;  %v241_v49 = vpack.c.bf16 %v237_v41, %v237_v41  ;;  %v1122_v30 = vld [vmem:[%s1553_s6] ss:$0 sm:$0xff] }
  0xf0   :  { %v236_v42 = vsel %vm228_vm3, %v182_v32, %v232_v36  ;;  %v1139_v39 = vld [vmem:[%s1555_s8] ss:$0 sm:$0xff] }
  0xf1   :  { %v240_v43 = vpack.c.bf16 %v236_v42, %v236_v42  ;;  %v238_v44 = vsel %vm230_vm4, %v223_v33, %v234_v40 }
  0xf2   :  { %v242_v47 = vpack.c.bf16 %v238_v44, %v238_v44 }
  0xf3   :  { %671 = vmatprep.mubr.bf16.mxu0 %v240_v43  ;;  %v1148_v43 = vld [vmem:[%s1556_s9] ss:$0 sm:$0xff] }
  0xf4   :  { %712 = vmatprep.mubr.bf16.mxu1 %v242_v47  ;;  %672 = vmatmul.mubr.bf16.vlgmr.msra.gmra.mxu0 %v239_v46 }
  0xf5   :  { %713 = vmatmul.mubr.bf16.vlgmr.msra.gmra.mxu1 %v241_v49  ;;  %1151 = vmatpush3.bf16.msra.mxu0 %v1319_v45  ;;  %v1149_v49 = vld [vmem:[#allocation2] ss:$0 sm:$0xff] }
  0xf6   :  { %1152 = vmatprep.subr.bf16.mxu0 %v1320_v48  ;;  %1182 = vmatpush3.bf16.msra.mxu1 %v1334_v63 }
  0xf7   :  { %1183 = vmatprep.subr.bf16.mxu1 %v1393_v0  ;;  %1197 = vmatprep.mubr.msk.bf16.mxu1 %vm1394_vm7, %v1393_v0 }
  0xf9   :  { %1153 = vmatpush3.bf16.msra.mxu0 %v1321_v50 }
  0xfa   :  { %1154 = vmatprep.subr.bf16.mxu0 %v1322_v51  ;;  %1184 = vmatpush3.bf16.msra.mxu1 %v1335_v1 }
  0xfb   :  { %1185 = vmatprep.subr.bf16.mxu1 %v1393_v0 }
  0xfd   :  { %1155 = vmatpush3.bf16.msra.mxu0 %v1323_v52 }
  0xfe   :  { %1156 = vmatprep.subr.bf16.mxu0 %v1324_v53  ;;  %1186 = vmatpush3.bf16.msra.mxu1 %v1336_v2 }
  0xff   :  { %1187 = vmatprep.subr.bf16.mxu1 %v1393_v0 }
 0x101   :  { %1157 = vmatpush3.bf16.msra.mxu0 %v1325_v54 }
 0x102   :  { %1158 = vmatprep.subr.bf16.mxu0 %v1326_v55  ;;  %1188 = vmatpush3.bf16.msra.mxu1 %v1337_v3 }
 0x103   :  { %1189 = vmatprep.subr.bf16.mxu1 %v1393_v0 }
 0x105   :  { %1159 = vmatpush3.bf16.msra.mxu0 %v1327_v56 }
 0x106   :  { %1160 = vmatprep.subr.bf16.mxu0 %v1328_v57  ;;  %1190 = vmatpush3.bf16.msra.mxu1 %v1338_v4 }
 0x107   :  { %1191 = vmatprep.subr.bf16.mxu1 %v1393_v0 }
 0x109   :  { %1161 = vmatpush3.bf16.msra.mxu0 %v1329_v58 }
 0x10a   :  { %1162 = vmatprep.subr.bf16.mxu0 %v1330_v59  ;;  %1192 = vmatpush3.bf16.msra.mxu1 %v1339_v26 }
 0x10b   :  { %1193 = vmatprep.subr.bf16.mxu1 %v1393_v0 }
 0x10d   :  { %1163 = vmatpush3.bf16.msra.mxu0 %v1331_v60 }
 0x10e   :  { %1164 = vmatprep.subr.bf16.mxu0 %v1332_v61  ;;  %1194 = vmatpush3.bf16.msra.mxu1 %v1340_v27 }
 0x10f   :  { %1195 = vmatprep.subr.bf16.mxu1 %v1393_v0 }
 0x111   :  { %1165 = vmatpush3.bf16.msra.mxu0 %v1333_v62 }
 0x112   :  { %1196 = vmatpush3.bf16.msra.mxu1 %v1341_v28 }
 0x1b4   :  { %v673_v8 = vpop.f32.mrf.mxu0 }
 0x1b5   :  { %v674_v9 = vadd.f32 %v673_v8, %v312_v6  ;;  %v714_v10 = vpop.f32.mrf.mxu1 }
 0x1b6   :  { %v675_v11 = vpop.f32.mrf.mxu0 }
 0x1b7   :  { %v715_v12 = vadd.f32 %v714_v10, %v674_v9  ;;  %v676_v13 = vadd.f32 %v675_v11, %v316_v7  ;;  %v716_v16 = vpop.f32.mrf.mxu1 }
 0x1b8   :  { %v677_v17 = vpop.f32.mrf.mxu0 }
 0x1b9   :  { %vm721_vm5 = vcmp.ge.f32.partialorder %v715_v12, 0.0  ;;  %v723_v19 = vmul.f32 0.01, %v715_v12  ;;  %v717_v20 = vadd.f32 %v716_v16, %v676_v13  ;;  %v718_v21 = vpop.f32.mrf.mxu1 }
 0x1ba   :  { %v678_v22 = vpop.f32.mrf.mxu0 }
 0x1bb   :  { %vm722_vm6 = vcmp.ge.f32.partialorder %v717_v20, 0.0  ;;  %v724_v23 = vmul.f32 0.01, %v717_v20  ;;  %v719_v24 = vpop.f32.mrf.mxu1  ;;  %v725_v15 = vsel %vm721_vm5, %v715_v12, %v723_v19 }
 0x1bc   :  { %v727_v18 = vpack.c.bf16 %v725_v15, %v725_v15 }
 0x1bd   :  { %v726_v25 = vsel %vm722_vm6, %v717_v20, %v724_v23 }
 0x1be   :  { %v728_v14 = vpack.c.bf16 %v726_v25, %v726_v25 }
 0x1c0   :  { %896 = vmatprep.mubr.bf16.mxu0 %v728_v14 }
 0x1c1   :  { %897 = vmatmul.mubr.bf16.vlgmr.msra.gmra.mxu0 %v727_v18 }
 0x281   :  { %v1166_v29 = vpop.f32.mrf.mxu0 }
 0x283   :  { %v1167_v31 = vpop.f32.mrf.mxu0 }
 0x284   :  { %v1168_v32 = vadd.f32 %v1167_v31, %v1166_v29 }
 0x285   :  { %v1169_v33 = vpop.f32.mrf.mxu0 }
 0x286   :  { %v899_v34 = vadd.f32 %v1168_v32, %v1122_v30 }
 0x287   :  { %v1170_v35 = vpop.f32.mrf.mxu0 }
 0x288   :  { %vm904_vm8 = vcmp.ge.f32.partialorder %v899_v34, 0.0  ;;  %v905_v36 = vmul.f32 0.01, %v899_v34 }
 0x28a   :  { %v906_v37 = vsel %vm904_vm8, %v899_v34, %v905_v36 }
 0x28b   :  { %v907_v38 = vpack.c.bf16 %v906_v37, %v906_v37 }
 0x28d   :  { %1198 = vmatmul.mubr.bf16.vlgmr.msra.gmra.mxu1 %v907_v38 }
 0x34d   :  { %v1013_v40 = vpop.f32.mrf.mxu1 }
 0x34e   :  { %v1014_v41 = vadd.f32 %v1139_v39, %v1013_v40 }
 0x34f   :  { %v1199_v42 = vpop.f32.mrf.mxu1 }
 0x350   :  { %v1019_v44 = vmax.f32 %v1014_v41, 0.0 }
 0x351   :  { %v1016_v45 = vpop.f32.mrf.mxu1 }
 0x352   :  { %v1027_v46 = vmul.f32 %v1148_v43, %v1019_v44 }
 0x353   :  { %v1200_v47 = vpop.f32.mrf.mxu1 }
 0x354   :  { %v1029_v48 = vsel %vm1028_vm9, %v1027_v46, 0.0 }
 0x355   :  { %1030 = vadd.xlane.f32.xlu0 %v1029_v48 }
 0x3de   :  { %v1031_v50 = vpop.xlane.xlu0 %1030 }
 0x3df   :  { %v1039_v51 = vadd.f32 %v1149_v49, %v1031_v50 }
 0x3e1   :  { %1041 = vst.msk [vmem:[%s1558_s11] sm:$0xff] %vm1040_vm10, %v1039_v51 }
 0x3e2   :  { %1046 = vsyncpa [#allocation4], 1 }
 0x3e3   :  { %1047 = vsyncpa [#allocation6], 1 }

</bundles_post_ra>
